<compile_context>
chip_gen: v7x
topology: tpu7x:2x2x1
jax: 0.10.0
libtpu: 0.0.40
codegen_flags: <defaults>
</compile_context>

<pallas_src>
import functools

import jax
import jax.numpy as jnp
from jax.experimental import pallas as pl
from jax.experimental.pallas import tpu as pltpu

LANES = 128
# ~4 MiB per input block -> 8 MiB for the (logit, target) pair per buffer,
# 16 MiB with double buffering: fits the 32 MiB scoped VMEM limit everywhere
# (v7x has 64 MiB physical per TC; v5e/v6e have 128 MiB).
MAX_BLOCK_PAIR_BYTES = 8 * 1024 * 1024
ACC_ROWS = 64                       # (64,128) accumulator = 8 independent vregs
VMEM_LIMIT_BYTES = 32 * 1024 * 1024


def _tensorcores_per_chip():
    # v5e / v6e expose one TensorCore per JAX device; v4 / v5p (megacore) and
    # v7x expose two, which the "parallel" shard axis can exploit.
    try:
        kind = jax.devices()[0].device_kind.lower()
    except Exception:
        return 1
    return 2 if any(tag in kind for tag in ("v7", "v4", "v5p")) else 1


def _dice_partial_kernel(logit_ref, target_ref, inter_out_ref, den_out_ref,
                         inter_acc, den_acc, *,
                         blocks_per_shard, tile_rows, acc_rows, valid_rows,
                         first_masked_block, need_mask):
    c = pl.program_id(0)                      # shard axis ("parallel")
    i = pl.program_id(1)                      # reduction axis ("arbitrary")

    @pl.when(i == 0)
    def _init():
        inter_acc[...] = jnp.zeros_like(inter_acc)
        den_acc[...] = jnp.zeros_like(den_acc)

    l = logit_ref[...].astype(jnp.float32)
    t = target_ref[...].astype(jnp.float32)

    def _accumulate(lv, tv):
        # VPU-only accumulation into (acc_rows, 128) f32 partials.  The sublane
        # split lies on vreg boundaries (acc_rows is a multiple of 8 for all
        # capped tiles), so this lowers to independent per-vreg vector adds
        # (short dependence chains) with no per-step XLU reduction and no
        # per-step (1,1) store.
        inter_acc[...] += (lv * tv).reshape(-1, acc_rows, LANES).sum(axis=0)
        den_acc[...] += (lv + tv).reshape(-1, acc_rows, LANES).sum(axis=0)

    if need_mask:
        logical = c * blocks_per_shard + i
        is_masked = logical >= first_masked_block

        @pl.when(is_masked)
        def _ragged_or_phantom():
            # Only the ragged last block and any phantom (clamped) blocks pay
            # for the mask; applied BEFORE the multiply/add so unspecified
            # (possibly NaN/Inf) out-of-range rows never propagate.
            base = logical * tile_rows
            row = jax.lax.broadcasted_iota(jnp.int32, (tile_rows, LANES), 0)
            keep = (base + row) < valid_rows
            _accumulate(jnp.where(keep, l, 0.0), jnp.where(keep, t, 0.0))

        @pl.when(jnp.logical_not(is_masked))
        def _interior():
            _accumulate(l, t)
    else:
        _accumulate(l, t)

    @pl.when(i == pl.num_programs(1) - 1)
    def _finalize():
        # Single cross-lane/sublane reduction per shard, once per kernel.
        inter_out_ref[0] = jnp.sum(inter_acc[...], keepdims=True)
        den_out_ref[0] = jnp.sum(den_acc[...], keepdims=True)


def dice_loss(logit, target, smooth=0.0, eps=1e-7):
    assert logit.shape == target.shape
    l = logit.reshape(-1)          # contiguous flatten: free bitcast reshape
    t = target.reshape(-1)
    n = l.shape[0]

    # Handle a <128-element ragged remainder in the wrapper instead of padding
    # both full arrays (jnp.pad would be an extra full HBM round-trip).
    n_aligned = n - (n % LANES)
    inter_extra = jnp.float32(0.0)
    den_extra = jnp.float32(0.0)
    if n_aligned != n:
        # TODO(synk): when numel % 128 != 0 the aligned-prefix slice below may
        # still materialize one copy; the common NCHW sizes stream zero-copy.
        l_rem = l[n_aligned:].astype(jnp.float32)
        t_rem = t[n_aligned:].astype(jnp.float32)
        inter_extra = jnp.sum(l_rem * t_rem)
        den_extra = jnp.sum(l_rem) + jnp.sum(t_rem)

    if n_aligned == 0:
        # Degenerate tiny input: pure-JAX fallback.
        return 1.0 - (2.0 * inter_extra + smooth) / (den_extra + smooth + eps)

    l2 = (l if n_aligned == n else l[:n_aligned]).reshape(-1, LANES)
    t2 = (t if n_aligned == n else t[:n_aligned]).reshape(-1, LANES)
    rows = n_aligned // LANES

    # Constant-BYTE tile sizing: bf16 streams 2x the rows of f32 per block so
    # the ~0.35 us per-grid-step overhead stays small on every chip generation.
    bytes_per_row = LANES * (l.dtype.itemsize + t.dtype.itemsize)
    cap_rows = max(((MAX_BLOCK_PAIR_BYTES // bytes_per_row) // ACC_ROWS) * ACC_ROWS, 8)
    tile_rows = min(cap_rows, rows)

    for acc_rows in (ACC_ROWS, 32, 16, 8):
        if tile_rows % acc_rows == 0:
            break
    else:
        acc_rows = tile_rows       # tiny / oddly-shaped inputs: trivial reshape

    total_blocks = pl.cdiv(rows, tile_rows)
    # Explicit shard axis only pays off on multi-TensorCore devices; on v5e/v6e
    # it would just be a serial loop that can force phantom-block masking.
    num_shards = min(_tensorcores_per_chip(), total_blocks)
    blocks_per_shard = pl.cdiv(total_blocks, num_shards)

    first_masked_block = total_blocks - 1 if rows % tile_rows else total_blocks
    need_mask = num_shards * blocks_per_shard > first_masked_block

    def block_index(c, i):
        # Clamp phantom blocks (past the real block count) onto the last real
        # block; the in-kernel mask (based on the *logical* index) zeroes them.
        return (jnp.minimum(c * blocks_per_shard + i, total_blocks - 1), 0)

    in_spec = pl.BlockSpec((tile_rows, LANES), block_index)
    out_spec = pl.BlockSpec((1, 1, 1), lambda c, i: (c, 0, 0))

    kernel = functools.partial(
        _dice_partial_kernel,
        blocks_per_shard=blocks_per_shard,
        tile_rows=tile_rows,
        acc_rows=acc_rows,
        valid_rows=rows,
        first_masked_block=first_masked_block,
        need_mask=need_mask,
    )

    cost = pl.CostEstimate(
        flops=3 * n_aligned,
        transcendentals=0,
        bytes_accessed=n_aligned * (l.dtype.itemsize + t.dtype.itemsize)
        + 2 * 4 * num_shards,
    )

    inter_p, den_p = pl.pallas_call(
        kernel,
        out_shape=(jax.ShapeDtypeStruct((num_shards, 1, 1), jnp.float32),
                   jax.ShapeDtypeStruct((num_shards, 1, 1), jnp.float32)),
        grid_spec=pltpu.PrefetchScalarGridSpec(
            num_scalar_prefetch=0,
            grid=(num_shards, blocks_per_shard),
            in_specs=[in_spec, in_spec],
            out_specs=[out_spec, out_spec],
            scratch_shapes=[pltpu.VMEM((acc_rows, LANES), jnp.float32),
                            pltpu.VMEM((acc_rows, LANES), jnp.float32)],
        ),
        compiler_params=pltpu.CompilerParams(
            dimension_semantics=("parallel", "arbitrary"),
            vmem_limit_bytes=VMEM_LIMIT_BYTES,
        ),
        cost_estimate=cost,
    )(l2, t2)

    intersection = jnp.sum(inter_p) + inter_extra
    sums = jnp.sum(den_p) + den_extra
    return 1.0 - (2.0 * intersection + smooth) / (sums + smooth + eps)


def _dice_ref(logit, target, smooth=0.0, eps=1e-7):
    lf = logit.astype(jnp.float32)
    tf = target.astype(jnp.float32)
    return 1.0 - (2.0 * jnp.sum(lf * tf) + smooth) / (
        jnp.sum(lf) + jnp.sum(tf) + smooth + eps)


if __name__ == "__main__":
    key = jax.random.PRNGKey(0)
    k1, k2, k3, k4 = jax.random.split(key, 4)

    # Primary small NCHW test (single block, single shard, no masking).
    logit = jax.nn.sigmoid(jax.random.normal(k1, (2, 4, 16, 16), jnp.float32))
    target = (jax.random.uniform(k2, (2, 4, 16, 16)) > 0.5).astype(jnp.float32)
    loss = jax.block_until_ready(dice_loss(logit, target, smooth=0.0, eps=1e-7))
    ref = _dice_ref(logit, target, 0.0, 1e-7)
    assert jnp.allclose(loss, ref, rtol=1e-5, atol=1e-6), (loss, ref)

    # Multi-block path with a ragged (gated-mask) tail block; exercises the
    # shard split / phantom-block masking on multi-TensorCore chips.
    logit2 = jax.nn.sigmoid(jax.random.normal(k3, (2, 4, 300, 500), jnp.float32))
    target2 = (jax.random.uniform(k4, (2, 4, 300, 500)) > 0.5).astype(jnp.float32)
    loss2 = jax.block_until_ready(dice_loss(logit2, target2, smooth=1.0, eps=1e-7))
    ref2 = _dice_ref(logit2, target2, 1.0, 1e-7)
    assert jnp.allclose(loss2, ref2, rtol=1e-4, atol=1e-6), (loss2, ref2)

    # Native bf16 streaming path (constant-byte tiles -> 2x rows per block).
    logit3 = jax.nn.sigmoid(jax.random.normal(k1, (2, 4, 32, 32), jnp.bfloat16))
    target3 = (jax.random.uniform(k2, (2, 4, 32, 32)) > 0.5).astype(jnp.bfloat16)
    loss3 = jax.block_until_ready(dice_loss(logit3, target3, smooth=0.0, eps=1e-7))
    ref3 = _dice_ref(logit3, target3, 0.0, 1e-7)
    assert jnp.allclose(loss3, ref3, rtol=1e-3, atol=1e-5), (loss3, ref3)

    # Element count not a multiple of 128: wrapper-side remainder, no jnp.pad.
    logit4 = jax.nn.sigmoid(jax.random.normal(k3, (2, 3, 11, 13), jnp.float32))
    target4 = (jax.random.uniform(k4, (2, 3, 11, 13)) > 0.5).astype(jnp.float32)
    loss4 = jax.block_until_ready(dice_loss(logit4, target4, smooth=0.0, eps=1e-7))
    ref4 = _dice_ref(logit4, target4, 0.0, 1e-7)
    assert jnp.allclose(loss4, ref4, rtol=1e-5, atol=1e-6), (loss4, ref4)

    print("KERNEL_OK")
</pallas_src>

<mosaic_0001>
module attributes {stable_mosaic.version = 11 : i64} {
  func.func @_dice_partial_kernel(%arg0: i32, %arg1: i32, %arg2: memref<16x128xf32, #tpu.memory_space<vmem>>, %arg3: memref<16x128xf32, #tpu.memory_space<vmem>>, %arg4: memref<1x1x1xf32, #tpu.memory_space<vmem>>, %arg5: memref<1x1x1xf32, #tpu.memory_space<vmem>>, %arg6: memref<16x128xf32, #tpu.memory_space<vmem>>, %arg7: memref<16x128xf32, #tpu.memory_space<vmem>>) attributes {dimension_semantics = [#tpu.dimension_semantics<parallel>, #tpu.dimension_semantics<arbitrary>], iteration_bounds = array<i64: 1, 1>, scalar_prefetch = 0 : i64, scratch_operands = 2 : i64, tpu.core_type = #tpu.core_type<tc>, window_params = [{transform_indices = @transform_0, window_bounds = array<i64: 16, 128>}, {transform_indices = @transform_1, window_bounds = array<i64: 16, 128>}, {transform_indices = @transform_2, window_bounds = array<i64: 1, 1, 1>}, {transform_indices = @transform_3, window_bounds = array<i64: 1, 1, 1>}]} {
    %c0_i32 = arith.constant 0 : i32
    %0 = arith.cmpi eq, %arg1, %c0_i32 : i32
    %1 = arith.extui %0 : i1 to i32
    %c0_i32_0 = arith.constant 0 : i32
    %2 = arith.cmpi ne, %1, %c0_i32_0 : i32
    scf.if %2 {
      %cst_15 = arith.constant 0.000000e+00 : f32
      %20 = vector.broadcast %cst_15 : f32 to vector<16x128xf32>
      %c0_16 = arith.constant 0 : index
      %c0_17 = arith.constant 0 : index
      %21 = vector.load %arg6[%c0_16, %c0_17] : memref<16x128xf32, #tpu.memory_space<vmem>>, vector<16x128xf32>
      tpu.vector_store %arg6[%c0_16, %c0_17], %20 {strides = array<i32>} : memref<16x128xf32, #tpu.memory_space<vmem>>, vector<16x128xf32>,
      %cst_18 = arith.constant 0.000000e+00 : f32
      %22 = vector.broadcast %cst_18 : f32 to vector<16x128xf32>
      %c0_19 = arith.constant 0 : index
      %c0_20 = arith.constant 0 : index
      %23 = vector.load %arg7[%c0_19, %c0_20] : memref<16x128xf32, #tpu.memory_space<vmem>>, vector<16x128xf32>
      tpu.vector_store %arg7[%c0_19, %c0_20], %22 {strides = array<i32>} : memref<16x128xf32, #tpu.memory_space<vmem>>, vector<16x128xf32>,
    } else {
    }
    %c0 = arith.constant 0 : index
    %c0_1 = arith.constant 0 : index
    %3 = vector.load %arg2[%c0, %c0_1] : memref<16x128xf32, #tpu.memory_space<vmem>>, vector<16x128xf32>
    %c0_2 = arith.constant 0 : index
    %c0_3 = arith.constant 0 : index
    %4 = vector.load %arg3[%c0_2, %c0_3] : memref<16x128xf32, #tpu.memory_space<vmem>>, vector<16x128xf32>
    %c0_4 = arith.constant 0 : index
    %c0_5 = arith.constant 0 : index
    %5 = vector.load %arg6[%c0_4, %c0_5] : memref<16x128xf32, #tpu.memory_space<vmem>>, vector<16x128xf32>
    %6 = arith.mulf %3, %4 : vector<16x128xf32>
    %7 = vector.shape_cast %6 : vector<16x128xf32> to vector<1x16x128xf32>
    %cst = arith.constant dense<0.000000e+00> : vector<16x128xf32>
    %8 = vector.multi_reduction <add>, %7, %cst [0] : vector<1x16x128xf32> to vector<16x128xf32>
    %9 = arith.addf %5, %8 : vector<16x128xf32>
    %c0_6 = arith.constant 0 : index
    %c0_7 = arith.constant 0 : index
    %10 = vector.load %arg6[%c0_6, %c0_7] : memref<16x128xf32, #tpu.memory_space<vmem>>, vector<16x128xf32>
    tpu.vector_store %arg6[%c0_6, %c0_7], %9 {strides = array<i32>} : memref<16x128xf32, #tpu.memory_space<vmem>>, vector<16x128xf32>,
    %c0_8 = arith.constant 0 : index
    %c0_9 = arith.constant 0 : index
    %11 = vector.load %arg7[%c0_8, %c0_9] : memref<16x128xf32, #tpu.memory_space<vmem>>, vector<16x128xf32>
    %12 = arith.addf %3, %4 : vector<16x128xf32>
    %13 = vector.shape_cast %12 : vector<16x128xf32> to vector<1x16x128xf32>
    %cst_10 = arith.constant dense<0.000000e+00> : vector<16x128xf32>
    %14 = vector.multi_reduction <add>, %13, %cst_10 [0] : vector<1x16x128xf32> to vector<16x128xf32>
    %15 = arith.addf %11, %14 : vector<16x128xf32>
    %c0_11 = arith.constant 0 : index
    %c0_12 = arith.constant 0 : index
    %16 = vector.load %arg7[%c0_11, %c0_12] : memref<16x128xf32, #tpu.memory_space<vmem>>, vector<16x128xf32>
    tpu.vector_store %arg7[%c0_11, %c0_12], %15 {strides = array<i32>} : memref<16x128xf32, #tpu.memory_space<vmem>>, vector<16x128xf32>,
    %c0_i32_13 = arith.constant 0 : i32
    %17 = arith.cmpi eq, %arg1, %c0_i32_13 : i32
    %18 = arith.extui %17 : i1 to i32
    %c0_i32_14 = arith.constant 0 : i32
    %19 = arith.cmpi ne, %18, %c0_i32_14 : i32
    scf.if %19 {
      %c0_15 = arith.constant 0 : index
      %c0_16 = arith.constant 0 : index
      %20 = vector.load %arg6[%c0_15, %c0_16] : memref<16x128xf32, #tpu.memory_space<vmem>>, vector<16x128xf32>
      %21 = vector.shape_cast %20 : vector<16x128xf32> to vector<1x16x128xf32>
      %cst_17 = arith.constant dense<0.000000e+00> : vector<1xf32>
      %22 = vector.multi_reduction <add>, %21, %cst_17 [1, 2] : vector<1x16x128xf32> to vector<1xf32>
      %23 = vector.shape_cast %22 : vector<1xf32> to vector<1x1x1xf32>
      %24 = vector.extract %23[0, 0, 0] : f32 from vector<1x1x1xf32>
      %25 = vector.broadcast %24 : f32 to vector<1x1xf32>
      %c0_18 = arith.constant 0 : index
      %c0_19 = arith.constant 0 : index
      %c0_20 = arith.constant 0 : index
      %26 = vector.load %arg4[%c0_18, %c0_19, %c0_20] : memref<1x1x1xf32, #tpu.memory_space<vmem>>, vector<1x1x1xf32>
      %27 = vector.shape_cast %26 : vector<1x1x1xf32> to vector<1x1xf32>
      %28 = vector.shape_cast %25 : vector<1x1xf32> to vector<1x1x1xf32>
      tpu.vector_store %arg4[%c0_18, %c0_19, %c0_20], %28 {strides = array<i32>} : memref<1x1x1xf32, #tpu.memory_space<vmem>>, vector<1x1x1xf32>,
      %c0_21 = arith.constant 0 : index
      %c0_22 = arith.constant 0 : index
      %29 = vector.load %arg7[%c0_21, %c0_22] : memref<16x128xf32, #tpu.memory_space<vmem>>, vector<16x128xf32>
      %30 = vector.shape_cast %29 : vector<16x128xf32> to vector<1x16x128xf32>
      %cst_23 = arith.constant dense<0.000000e+00> : vector<1xf32>
      %31 = vector.multi_reduction <add>, %30, %cst_23 [1, 2] : vector<1x16x128xf32> to vector<1xf32>
      %32 = vector.shape_cast %31 : vector<1xf32> to vector<1x1x1xf32>
      %33 = vector.extract %32[0, 0, 0] : f32 from vector<1x1x1xf32>
      %34 = vector.broadcast %33 : f32 to vector<1x1xf32>
      %c0_24 = arith.constant 0 : index
      %c0_25 = arith.constant 0 : index
      %c0_26 = arith.constant 0 : index
      %35 = vector.load %arg5[%c0_24, %c0_25, %c0_26] : memref<1x1x1xf32, #tpu.memory_space<vmem>>, vector<1x1x1xf32>
      %36 = vector.shape_cast %35 : vector<1x1x1xf32> to vector<1x1xf32>
      %37 = vector.shape_cast %34 : vector<1x1xf32> to vector<1x1x1xf32>
      tpu.vector_store %arg5[%c0_24, %c0_25, %c0_26], %37 {strides = array<i32>} : memref<1x1x1xf32, #tpu.memory_space<vmem>>, vector<1x1x1xf32>,
    } else {
    }
    return
  }
  func.func @transform_0(%arg0: i32, %arg1: i32) -> (i32, i32) {
    %c1_i32 = arith.constant 1 : i32
    %0 = arith.muli %arg0, %c1_i32 : i32
    %1 = arith.addi %0, %arg1 : i32
    %c0_i32 = arith.constant 0 : i32
    %2 = arith.minsi %1, %c0_i32 : i32
    %c0_i32_0 = arith.constant 0 : i32
    %c0_i32_1 = arith.constant 0 : i32
    return %2, %c0_i32_0 : i32, i32
  }
  func.func @transform_1(%arg0: i32, %arg1: i32) -> (i32, i32) {
    %c1_i32 = arith.constant 1 : i32
    %0 = arith.muli %arg0, %c1_i32 : i32
    %1 = arith.addi %0, %arg1 : i32
    %c0_i32 = arith.constant 0 : i32
    %2 = arith.minsi %1, %c0_i32 : i32
    %c0_i32_0 = arith.constant 0 : i32
    %c0_i32_1 = arith.constant 0 : i32
    return %2, %c0_i32_0 : i32, i32
  }
  func.func @transform_2(%arg0: i32, %arg1: i32) -> (i32, i32, i32) {
    %c0_i32 = arith.constant 0 : i32
    %c0_i32_0 = arith.constant 0 : i32
    %c0_i32_1 = arith.constant 0 : i32
    return %arg0, %c0_i32, %c0_i32_0 : i32, i32, i32
  }
  func.func @transform_3(%arg0: i32, %arg1: i32) -> (i32, i32, i32) {
    %c0_i32 = arith.constant 0 : i32
    %c0_i32_0 = arith.constant 0 : i32
    %c0_i32_1 = arith.constant 0 : i32
    return %arg0, %c0_i32, %c0_i32_0 : i32, i32, i32
  }
}

</mosaic_0001>

<bundles_post_ra>
// kernel: tpu_custom_call.1
= control target key start
LH: loop header
LB: loop body
LE: loop exit
PB: predicated region body
PF: predicated region fallthrough
CT: control target
= control target key end

     0   :  { %9 = vsyncpa [#allocation5], 0  ;;  %s343_s0 = inlined_call_operand.hbm [shape: f32[16,128], index: 0, kind: input, shape index: {}]   ;;  %s344_s1 = inlined_call_operand.hbm [shape: f32[16,128], index: 1, kind: input, shape index: {}]   ;;  %s345_s2 = inlined_call_operand.hbm [shape: f32[1,1,1], index: 2, kind: output, shape index: {0}]   ;;  %s346_s3 = inlined_call_operand.hbm [shape: f32[1,1,1], index: 3, kind: output, shape index: {1}]  }
   0x1   :  { %10 = vsyncpa [#allocation8], 0 }
   0x2   :  { %11 = vsyncpa [#allocation6], 0 }
   0x3   :  { %12 = vsyncpa [#allocation11], 0  ;;  %s267_s12 = smov [#allocation4]   ;;  %s171_s16 = scalar_lea.hbm %s343_s0, 256 }
   0x4   :  { %s24_s13 = sshll.u32 %s267_s12, 4  ;;  %p172_p0 = scmp.ne.s32.totalorder %s343_s0, %s171_s16  ;;  %s25_s13 = int_to_ptr.vmem [resolvable:$true] %s24_s13 }
   0x5   :  { %p175_p1 = scmp.lt.u32.totalorder %s171_s16, %s343_s0 }
   0x7   :  { %p177_p2 = pnand %p175_p1, %p172_p0 }
   0x9   :  { %180 = shalt.err (!%p177_p2)
}
   0xa   :  { %s181_s21 = scalar_lea.vmem %s25_s13, 256  ;;  %p186_p4 = scmp.lt.s32.totalorder %s25_s13, %s25_s13 }
   0xb   :  { %p182_p3 = scmp.ne.s32.totalorder %s25_s13, %s181_s21  ;;  %p187_p5 = scmp.lt.s32.totalorder %s181_s21, %s181_s21 }
   0xd   :  { %p188_p6 = por %p187_p5, %p186_p4 }
   0xf   :  { %p189_p7 = pnand %p188_p6, %p182_p3 }
  0x11   :  { %192 = shalt.err (!%p189_p7)
}
  0x12   :  { %s268_s22 = smov 128   ;;  %s269_s23 = smov 8  }
  0x13   :  { %30 = dma.hbm_to_vmem [thread:$0]  %s343_s0, 256, %s25_s13, [#allocation5], %s268_s22, %s268_s22, %s269_s23  }
  0x14   :  { %s270_s26 = smov [#allocation7]   ;;  %s193_s30 = scalar_lea.hbm %s344_s1, 256 }
  0x15   :  { %s42_s27 = sshll.u32 %s270_s26, 4  ;;  %p194_p8 = scmp.ne.s32.totalorder %s344_s1, %s193_s30  ;;  %s43_s27 = int_to_ptr.vmem [resolvable:$true] %s42_s27 }
  0x16   :  { %p197_p9 = scmp.lt.u32.totalorder %s193_s30, %s344_s1 }
  0x18   :  { %p199_p10 = pnand %p197_p9, %p194_p8 }
  0x1a   :  { %202 = shalt.err (!%p199_p10)
}
  0x1b   :  { %s203_s8 = scalar_lea.vmem %s43_s27, 256  ;;  %p208_p12 = scmp.lt.s32.totalorder %s43_s27, %s43_s27 }
  0x1c   :  { %p204_p11 = scmp.ne.s32.totalorder %s43_s27, %s203_s8  ;;  %p209_p13 = scmp.lt.s32.totalorder %s203_s8, %s203_s8 }
  0x1e   :  { %p210_p0 = por %p209_p13, %p208_p12 }
  0x20   :  { %p211_p1 = pnand %p210_p0, %p204_p11 }
  0x22   :  { %214 = shalt.err (!%p211_p1)
}
  0x23   :  { %48 = dma.hbm_to_vmem [thread:$0]  %s344_s1, 256, %s43_s27, [#allocation8], %s268_s22, %s268_s22, %s269_s23  }
  0x24   :  { %259 = dma.done.wait [#allocation5], 256  }
  0x25   :  { %260 = vsyncadd [#allocation5], 4294967040 }
  0x26   :  { %261 = dma.done.wait [#allocation8], 256  }
  0x27   :  { %262 = vsyncadd [#allocation8], 4294967040  ;;  %v71_v0 = vld [vmem:[#allocation4] sm:$0xff]  ;;  %v72_v1 = vld [vmem:[#allocation4 + $0x8] sm:$0xff]  ;;  %s271_s1 = smov [#allocation9]   ;;  %vm111_vm0 = vcmask 0  }
  0x28   :  { %v73_v2 = vld [vmem:[#allocation7] sm:$0xff]  ;;  %v74_v3 = vld [vmem:[#allocation7 + $0x8] sm:$0xff]  ;;  %s133_s10 = sshll.u32 %s271_s1, 4  ;;  %s272_s12 = smov [#allocation10]   ;;  %s134_s10 = int_to_ptr.vmem [resolvable:$true] %s133_s10 }
  0x29   :  { %v77_v4 = vmul.f32 %v73_v2, %v71_v0  ;;  %v78_v5 = vmul.f32 %v74_v3, %v72_v1  ;;  %v87_v6 = vadd.f32 %v73_v2, %v71_v0  ;;  %v88_v7 = vadd.f32 %v74_v3, %v72_v1  ;;  %s143_s13 = sshll.u32 %s272_s12, 4  ;;  %s215_s14 = scalar_lea.vmem %s134_s10, 16  ;;  %s144_s13 = int_to_ptr.vmem [resolvable:$true] %s143_s13 }
  0x2a   :  { %p216_p2 = scmp.ne.s32.totalorder %s134_s10, %s215_s14  ;;  %s219_s15 = scalar_lea.vmem %s134_s10, 32 }
  0x2b   :  { %v100_v8 = vadd.f32 %v78_v5, %v77_v4  ;;  %v115_v9 = vadd.f32 %v88_v7, %v87_v6  ;;  %p220_p3 = scmp.lt.s32.totalorder %s134_s10, %s134_s10  ;;  %p221_p4 = scmp.lt.s32.totalorder %s219_s15, %s215_s14 }
  0x2d   :  { %101 = vadd.xlane.f32.xlu0 %v100_v8  ;;  %p222_p5 = por %p221_p4, %p220_p3 }
  0x2f   :  { %p223_p6 = pnand %p222_p5, %p216_p2 }
  0x31   :  { %116 = vadd.xlane.f32.xlu0 %v115_v9 }
  0xba   :  { %v102_v10 = vpop.xlane.xlu0 %101 }
  0xbb   :  { %v103_v11 = vrot.slane %v102_v10, 4 }
  0xbd   :  { %v104_v12 = vadd.f32 %v103_v11, %v102_v10 }
  0xbe   :  { %v117_v13 = vpop.xlane.xlu0 %116 }
  0xbf   :  { %v105_v14 = vrot.slane %v104_v12, 2  ;;  %v118_v15 = vrot.slane %v117_v13, 4 }
  0xc1   :  { %v119_v16 = vadd.f32 %v118_v15, %v117_v13  ;;  %v106_v17 = vadd.f32 %v105_v14, %v104_v12 }
  0xc3   :  { %v120_v18 = vrot.slane %v119_v16, 2  ;;  %v107_v19 = vrot.slane %v106_v17, 1 }
  0xc5   :  { %v121_v20 = vadd.f32 %v120_v18, %v119_v16  ;;  %v108_v21 = vadd.f32 %v107_v19, %v106_v17 }
  0xc7   :  { %161 = vpush %v108_v21  ;;  %v122_v22 = vrot.slane %v121_v20, 1 }
  0xc9   :  { %v123_v23 = vadd.f32 %v122_v22, %v121_v20 }
  0xcb   :  { %163 = vpush %v123_v23 }
  0xf8   :  { %s162_s11 = spop %161 }
  0xf9   :  { %v110_v24 = vstv %s162_s11 }
  0xfa   :  { %112 = vst.msk [vmem:[#allocation9] sm:$0x1] %vm111_vm0, %v110_v24 }
  0xfb   :  { %226 = shalt.err (!%p223_p6)
}
  0xfc   :  { %s227_s18 = scalar_lea.hbm %s345_s2, 16 }
  0xfd   :  { %p228_p7 = scmp.ne.s32.totalorder %s345_s2, %s227_s18  ;;  %p231_p8 = scmp.lt.u32.totalorder %s227_s18, %s345_s2 }
  0xff   :  { %p233_p9 = pnand %p231_p8, %p228_p7 }
 0x101   :  { %236 = shalt.err (!%p233_p9)
}
 0x102   :  { %136 = dma.vmem_to_hbm [thread:$0]  %s134_s10, 16, %s345_s2, [#allocation6]  }
 0x103   :  { %s164_s25 = spop %163  ;;  %s237_s26 = scalar_lea.vmem %s144_s13, 16 }
 0x104   :  { %v125_v25 = vstv %s164_s25  ;;  %p238_p10 = scmp.ne.s32.totalorder %s144_s13, %s237_s26  ;;  %s241_s27 = scalar_lea.vmem %s144_s13, 32 }
 0x105   :  { %126 = vst.msk [vmem:[#allocation10] sm:$0x1] %vm111_vm0, %v125_v25  ;;  %p242_p11 = scmp.lt.s32.totalorder %s144_s13, %s144_s13  ;;  %p243_p12 = scmp.lt.s32.totalorder %s241_s27, %s237_s26 }
 0x107   :  { %p244_p13 = por %p243_p12, %p242_p11 }
 0x109   :  { %p245_p0 = pnand %p244_p13, %p238_p10 }
 0x10b   :  { %248 = shalt.err (!%p245_p0)
}
 0x10c   :  { %s249_s30 = scalar_lea.hbm %s346_s3, 16 }
 0x10d   :  { %p250_p1 = scmp.ne.s32.totalorder %s346_s3, %s249_s30  ;;  %p253_p2 = scmp.lt.u32.totalorder %s249_s30, %s346_s3 }
 0x10f   :  { %p255_p3 = pnand %p253_p2, %p250_p1 }
 0x111   :  { %258 = shalt.err (!%p255_p3)
}
 0x112   :  { %146 = dma.vmem_to_hbm [thread:$0]  %s144_s13, 16, %s346_s3, [#allocation11]  }
 0x113   :  { %263 = dma.done.wait [#allocation6], 16  }
 0x114   :  { %264 = vsyncadd [#allocation6], 4294967280 }
 0x115   :  { %265 = dma.done.wait [#allocation11], 16  }
 0x116   :  { %266 = vsyncadd [#allocation11], 4294967280 }
 0x117   :  { %153 = vsyncpa [#allocation5], 1 }
 0x118   :  { %154 = vsyncpa [#allocation8], 1 }
 0x119   :  { %155 = vsyncpa [#allocation6], 1 }
 0x11a   :  { %156 = vsyncpa [#allocation11], 1 }

</bundles_post_ra>
